<compile_context>
chip_gen: v7x
topology: tpu7x:2x2x1
jax: 0.10.0
libtpu: 0.0.40
codegen_flags: <defaults>
</compile_context>

<pallas_src>
import jax
import jax.numpy as jnp
import numpy as np
from jax.experimental import pallas as pl
from jax.experimental.pallas import tpu as pltpu

EPS = 1e-5  # PyTorch BatchNorm2d default eps


def _round_up(x, m):
    return (x + m - 1) // m * m


def _vmem_budget_bytes():
    """Generation-aware VMEM budget (v5e/v6e: 128 MiB physical, v7x: 64 MiB)."""
    try:
        cap = int(pltpu.get_tpu_info().vmem_capacity_bytes)
    except Exception:
        cap = 64 * 1024 * 1024  # conservative default (v7x-sized)
    return (cap * 3) // 4


def _fused_footprint_bytes(tmr, kin, lp, co, x_bytes):
    """Rough VMEM footprint: double-buffered x / out blocks + constant operands + scratch."""
    io = 2 * tmr * kin * x_bytes + 2 * tmr * lp * 4
    consts = 2 * (kin * lp * x_bytes + 3 * lp * 4 + 2 * lp * co * 4)
    scratch = 4 * lp * 4
    return io + consts + scratch


# ------------------------------------------------------------------ fused 2-phase kernel
def _fused_forward(x4, w_big, b_col, r_mat, t_mat, g_col, be_col, *,
                   tmr, grid_m, M4p, Lp, pad, inv_n, vmem_limit):
    Kin = x4.shape[1]
    Co = r_mat.shape[1]

    def kernel(x_ref, w_ref, b_ref, r_ref, t_ref, g_ref, bt_ref, o_ref,
               s_ref, ss_ref, sc_ref, sh_ref):
        p = pl.program_id(0)   # 0: stats accumulation, 1: recompute + normalize
        i = pl.program_id(1)

        @pl.when((p == 0) & (i == 0))
        def _():
            s_ref[...] = jnp.zeros_like(s_ref)
            ss_ref[...] = jnp.zeros_like(ss_ref)

        @pl.when(p == 0)
        def _():
            y = jnp.dot(x_ref[...], w_ref[...], preferred_element_type=jnp.float32)
            y = jnp.maximum(y + b_ref[...], 0.0)                       # bias + ReLU
            # Column sums on the (nearly idle) MXU instead of VPU/XLU cross-sublane reduces.
            ones = jnp.ones((1, tmr), jnp.float32)
            s_ref[...] += jnp.dot(ones, y, preferred_element_type=jnp.float32)
            ss_ref[...] += jnp.dot(ones, y * y, preferred_element_type=jnp.float32)

        @pl.when((p == 1) & (i == 0))
        def _():
            s = s_ref[...]
            ss = ss_ref[...]
            if pad:
                # Zero-padded tail rows produced exactly relu(bias) per lane: subtract their
                # closed-form contribution once (no per-element mask in the hot loop).
                rb = jnp.maximum(b_ref[...], 0.0)
                s = s - float(pad) * rb
                ss = ss - float(pad) * rb * rb
            # lane -> channel totals -> back to lanes via small 0/1 matmuls
            ch_s = jnp.dot(s, r_ref[...], preferred_element_type=jnp.float32)    # (1, Co)
            ch_ss = jnp.dot(ss, r_ref[...], preferred_element_type=jnp.float32)
            mean = jnp.dot(ch_s, t_ref[...], preferred_element_type=jnp.float32) * inv_n
            msq = jnp.dot(ch_ss, t_ref[...], preferred_element_type=jnp.float32) * inv_n
            var = jnp.maximum(msq - mean * mean, 0.0)                  # biased var (PyTorch BN)
            scale = g_ref[...] * jax.lax.rsqrt(var + EPS)
            sc_ref[...] = scale
            sh_ref[...] = bt_ref[...] - mean * scale

        @pl.when(p == 1)
        def _():
            # Recompute the cheap conv (tiny contraction) and apply the BN affine; the
            # activation never lives in VMEM or round-trips HBM between phases.
            y = jnp.dot(x_ref[...], w_ref[...], preferred_element_type=jnp.float32)
            y = jnp.maximum(y + b_ref[...], 0.0)
            o_ref[...] = y * sc_ref[...] + sh_ref[...]

    return pl.pallas_call(
        kernel,
        out_shape=jax.ShapeDtypeStruct((M4p, Lp), jnp.float32),
        grid_spec=pltpu.PrefetchScalarGridSpec(
            num_scalar_prefetch=0,
            grid=(2, grid_m),
            in_specs=[
                pl.BlockSpec((tmr, Kin), lambda p, i: (i, 0)),   # x block (both phases)
                pl.BlockSpec((Kin, Lp), lambda p, i: (0, 0)),    # block-diagonal weight
                pl.BlockSpec((1, Lp), lambda p, i: (0, 0)),      # bias per lane
                pl.BlockSpec((Lp, Co), lambda p, i: (0, 0)),     # lane -> channel reduce
                pl.BlockSpec((Co, Lp), lambda p, i: (0, 0)),     # channel -> lane broadcast
                pl.BlockSpec((1, Lp), lambda p, i: (0, 0)),      # gamma per lane
                pl.BlockSpec((1, Lp), lambda p, i: (0, 0)),      # beta per lane
            ],
            out_specs=pl.BlockSpec((tmr, Lp), lambda p, i: (i * p, 0)),  # written in phase 1
            scratch_shapes=[pltpu.VMEM((1, Lp), jnp.float32)] * 4,  # sum, sumsq, scale, shift
        ),
        compiler_params=pltpu.CompilerParams(
            # NOTE: stats accumulate across the block axis, so the grid stays sequential
            # (single TensorCore); a v7x megacore split would need per-core partial stats.
            dimension_semantics=("arbitrary", "arbitrary"),
            vmem_limit_bytes=vmem_limit),
    )(x4, w_big, b_col, r_mat, t_mat, g_col, be_col)


# --------------------------------------------------------------------------------- wrapper
def vae32_upblock_forward(x, weight, bias, gamma, beta, *,
                          max_rows_per_block=1024,
                          matmul_dtype=None,        # e.g. jnp.bfloat16 for MXU inputs
                          max_contract=256):        # MXU pass: 128 on v5e, 256 on v6e/v7x
    """x: [N, Cin, H, W] (NCHW, like PyTorch).  weight: [Cin, Co, 2, 2] (ConvTranspose2d
    layout), bias/gamma/beta: [Co].  Returns [N, Co, 2H, 2W]."""
    N, Cin, H, W = x.shape
    Co = weight.shape[1]
    M = N * H * W
    K4 = Co * 4

    # Pack P output pixels per row (lane-dense) while keeping the contraction P*Cin within
    # ~one MXU pass and P | M (so packing is a pure reshape).
    P = max(1, min(128 // K4 if K4 <= 128 else 1,
                   max_contract // Cin if Cin <= max_contract else 1))
    while P > 1 and M % P:
        P -= 1
    L = P * K4                       # real lane width
    Lp = _round_up(L, 128)           # padded lane width -> unmasked full-lane stores
    M4 = M // P
    Kin = P * Cin

    x_bytes = np.dtype(matmul_dtype).itemsize if matmul_dtype is not None else 4
    budget = _vmem_budget_bytes()
    tmr = min(_round_up(M4, 8), _round_up(max_rows_per_block, 8))
    while tmr > 8 and _fused_footprint_bytes(tmr, Kin, Lp, Co, x_bytes) > budget:
        tmr = max(8, _round_up(tmr // 2, 8))
    grid_m = pl.cdiv(M4, tmr)
    M4p = grid_m * tmr
    pad = M4p - M4

    # wrapper-side layout prep (NCHW -> packed pixel rows); cheap next to the activation.
    x2d = jnp.transpose(x, (0, 2, 3, 1)).reshape(M, Cin)
    x4 = x2d.reshape(M4, Kin)
    if pad:
        x4 = jnp.pad(x4, ((0, pad), (0, 0)))

    w2d = weight.reshape(Cin, K4)                          # col = co*4 + kh*2 + kw
    w_big = jnp.kron(jnp.eye(P, dtype=w2d.dtype), w2d)     # block-diagonal: [Kin, L]
    if Lp != L:
        w_big = jnp.pad(w_big, ((0, 0), (0, Lp - L)))      # dead lanes: zero weights

    def lane_expand(v):
        row = jnp.tile(jnp.repeat(v, 4), P)
        if Lp != L:
            row = jnp.pad(row, (0, Lp - L))                # dead lanes: zero (no stat impact)
        return row.reshape(1, Lp).astype(jnp.float32)

    b_col = lane_expand(bias)
    g_col = lane_expand(gamma)
    be_col = lane_expand(beta)

    # lane->channel reduce (Lp,Co) and channel->lane broadcast (Co,Lp) 0/1 matrices
    chan = np.tile(np.repeat(np.arange(Co), 4), P)         # channel owning each real lane
    r_np = np.zeros((Lp, Co), np.float32)
    r_np[np.arange(L), chan] = 1.0
    r_mat = jnp.asarray(r_np)
    t_mat = jnp.asarray(r_np.T)

    if matmul_dtype is not None:                           # bf16 MXU inputs; stats stay f32
        x4 = x4.astype(matmul_dtype)
        w_big = w_big.astype(matmul_dtype)

    inv_n = 1.0 / float(4 * M)                             # BN reduces over N*2H*2W = 4M elems

    y_pk = _fused_forward(x4, w_big, b_col, r_mat, t_mat, g_col, be_col,
                          tmr=tmr, grid_m=grid_m, M4p=M4p, Lp=Lp,
                          pad=pad, inv_n=inv_n, vmem_limit=budget)

    # unpack: [M4p, Lp] -> real rows/lanes -> NCHW [N, Co, 2H, 2W]
    # TODO(synk): if the consumer accepts NHWC / packed layout, skip this final transpose --
    # the 2x-upsample NCHW interleave is a full extra HBM round-trip done by XLA.
    out = y_pk[:M4, :L].reshape(M, Co, 2, 2).reshape(N, H, W, Co, 2, 2)
    out = jnp.transpose(out, (0, 3, 1, 4, 2, 5)).reshape(N, Co, 2 * H, 2 * W)
    return out


# ------------------------------------------------------------------------------- reference
def reference_forward(x, weight, bias, gamma, beta):
    """Pure-JAX reference reproducing PyTorch ConvTranspose2d(k=2,s=2) -> ReLU -> BatchNorm2d."""
    N, Cin, H, W = x.shape
    Co = weight.shape[1]
    blk = jnp.einsum('nchw,cokl->nohwkl', x, weight) + bias[None, :, None, None, None, None]
    out = jnp.transpose(blk, (0, 1, 2, 4, 3, 5)).reshape(N, Co, 2 * H, 2 * W)
    out = jnp.maximum(out, 0.0)
    mean = out.mean(axis=(0, 2, 3), keepdims=True)
    var = out.var(axis=(0, 2, 3), keepdims=True)   # biased
    out = (out - mean) / jnp.sqrt(var + EPS)
    return out * gamma[None, :, None, None] + beta[None, :, None, None]


if __name__ == "__main__":
    key = jax.random.PRNGKey(0)
    k1, k2, k3, k4, k5 = jax.random.split(key, 5)
    # Small shapes consistent with the module: NCHW input, in_channels=4, out_channels=8.
    N, Cin, Co, H, W = 2, 4, 8, 16, 16

    x = jax.random.normal(k1, (N, Cin, H, W), jnp.float32)
    weight = jax.random.normal(k2, (Cin, Co, 2, 2), jnp.float32) * 0.1   # ConvTranspose2d weight
    bias = jax.random.normal(k3, (Co,), jnp.float32) * 0.1               # ConvTranspose2d bias
    gamma = 1.0 + 0.1 * jax.random.normal(k4, (Co,), jnp.float32)        # BN weight
    beta = 0.1 * jax.random.normal(k5, (Co,), jnp.float32)               # BN bias

    ref = reference_forward(x, weight, bias, gamma, beta)

    # 1) default: single block (grid_m == 1), exact 128-lane packing (Co*4*P == 128)
    out = jax.block_until_ready(vae32_upblock_forward(x, weight, bias, gamma, beta))
    assert out.shape == (N, Co, 2 * H, 2 * W)
    np.testing.assert_allclose(np.asarray(out), np.asarray(ref), atol=2e-4, rtol=2e-4)

    # 2) multiple blocks + zero-padded tail (closed-form pad correction path)
    out2 = jax.block_until_ready(
        vae32_upblock_forward(x, weight, bias, gamma, beta, max_rows_per_block=48))
    np.testing.assert_allclose(np.asarray(out2), np.asarray(ref), atol=2e-4, rtol=2e-4)

    # 3) bf16 MXU inputs (stats/accumulation stay f32) -- loose tolerance for bf16 rounding
    out3 = jax.block_until_ready(
        vae32_upblock_forward(x, weight, bias, gamma, beta, matmul_dtype=jnp.bfloat16))
    np.testing.assert_allclose(np.asarray(out3), np.asarray(ref), atol=1e-1, rtol=1e-1)

    # 4) channel count whose lane width does not tile 128 (Co=6 -> dead-lane padding path)
    Co2, H2, W2 = 6, 8, 8
    kk = jax.random.split(jax.random.PRNGKey(1), 5)
    x_b = jax.random.normal(kk[0], (N, Cin, H2, W2), jnp.float32)
    w_b = jax.random.normal(kk[1], (Cin, Co2, 2, 2), jnp.float32) * 0.1
    b_b = jax.random.normal(kk[2], (Co2,), jnp.float32) * 0.1
    g_b = 1.0 + 0.1 * jax.random.normal(kk[3], (Co2,), jnp.float32)
    be_b = 0.1 * jax.random.normal(kk[4], (Co2,), jnp.float32)
    ref_b = reference_forward(x_b, w_b, b_b, g_b, be_b)
    out4 = jax.block_until_ready(vae32_upblock_forward(x_b, w_b, b_b, g_b, be_b))
    np.testing.assert_allclose(np.asarray(out4), np.asarray(ref_b), atol=2e-4, rtol=2e-4)

    print("KERNEL_OK")
</pallas_src>

<mosaic_0001>
module attributes {stable_mosaic.version = 11 : i64} {
  func.func @kernel(%arg0: i32, %arg1: i32, %arg2: memref<128x16xf32, #tpu.memory_space<vmem>>, %arg3: memref<16x128xf32, #tpu.memory_space<vmem>>, %arg4: memref<1x128xf32, #tpu.memory_space<vmem>>, %arg5: memref<128x8xf32, #tpu.memory_space<vmem>>, %arg6: memref<8x128xf32, #tpu.memory_space<vmem>>, %arg7: memref<1x128xf32, #tpu.memory_space<vmem>>, %arg8: memref<1x128xf32, #tpu.memory_space<vmem>>, %arg9: memref<128x128xf32, #tpu.memory_space<vmem>>, %arg10: memref<1x128xf32, #tpu.memory_space<vmem>>, %arg11: memref<1x128xf32, #tpu.memory_space<vmem>>, %arg12: memref<1x128xf32, #tpu.memory_space<vmem>>, %arg13: memref<1x128xf32, #tpu.memory_space<vmem>>) attributes {dimension_semantics = [#tpu.dimension_semantics<arbitrary>, #tpu.dimension_semantics<arbitrary>], iteration_bounds = array<i64: 2, 1>, scalar_prefetch = 0 : i64, scratch_operands = 4 : i64, tpu.core_type = #tpu.core_type<tc>, window_params = [{transform_indices = @transform_0, window_bounds = array<i64: 128, 16>}, {pipeline_mode = #tpu.pipeline_mode<synchronous>, transform_indices = @transform_1, window_bounds = array<i64: 16, 128>}, {pipeline_mode = #tpu.pipeline_mode<synchronous>, transform_indices = @transform_2, window_bounds = array<i64: 1, 128>}, {pipeline_mode = #tpu.pipeline_mode<synchronous>, transform_indices = @transform_3, window_bounds = array<i64: 128, 8>}, {pipeline_mode = #tpu.pipeline_mode<synchronous>, transform_indices = @transform_4, window_bounds = array<i64: 8, 128>}, {pipeline_mode = #tpu.pipeline_mode<synchronous>, transform_indices = @transform_5, window_bounds = array<i64: 1, 128>}, {pipeline_mode = #tpu.pipeline_mode<synchronous>, transform_indices = @transform_6, window_bounds = array<i64: 1, 128>}, {transform_indices = @transform_7, window_bounds = array<i64: 128, 128>}]} {
    %c0_i32 = arith.constant 0 : i32
    %0 = arith.cmpi eq, %arg0, %c0_i32 : i32
    %c0_i32_0 = arith.constant 0 : i32
    %1 = arith.cmpi eq, %arg1, %c0_i32_0 : i32
    %2 = arith.andi %0, %1 : i1
    %3 = arith.extui %2 : i1 to i32
    %c0_i32_1 = arith.constant 0 : i32
    %4 = arith.cmpi ne, %3, %c0_i32_1 : i32
    scf.if %4 {
      %cst = arith.constant 0.000000e+00 : f32
      %16 = vector.broadcast %cst : f32 to vector<1x128xf32>
      %c0 = arith.constant 0 : index
      %c0_8 = arith.constant 0 : index
      %17 = vector.load %arg10[%c0, %c0_8] : memref<1x128xf32, #tpu.memory_space<vmem>>, vector<1x128xf32>
      tpu.vector_store %arg10[%c0, %c0_8], %16 {strides = array<i32>} : memref<1x128xf32, #tpu.memory_space<vmem>>, vector<1x128xf32>,
      %cst_9 = arith.constant 0.000000e+00 : f32
      %18 = vector.broadcast %cst_9 : f32 to vector<1x128xf32>
      %c0_10 = arith.constant 0 : index
      %c0_11 = arith.constant 0 : index
      %19 = vector.load %arg11[%c0_10, %c0_11] : memref<1x128xf32, #tpu.memory_space<vmem>>, vector<1x128xf32>
      tpu.vector_store %arg11[%c0_10, %c0_11], %18 {strides = array<i32>} : memref<1x128xf32, #tpu.memory_space<vmem>>, vector<1x128xf32>,
    } else {
    }
    %c0_i32_2 = arith.constant 0 : i32
    %5 = arith.cmpi eq, %arg0, %c0_i32_2 : i32
    %6 = arith.extui %5 : i1 to i32
    %c0_i32_3 = arith.constant 0 : i32
    %7 = arith.cmpi ne, %6, %c0_i32_3 : i32
    scf.if %7 {
      %c0 = arith.constant 0 : index
      %c0_8 = arith.constant 0 : index
      %16 = vector.load %arg2[%c0, %c0_8] : memref<128x16xf32, #tpu.memory_space<vmem>>, vector<128x16xf32>
      %c0_9 = arith.constant 0 : index
      %c0_10 = arith.constant 0 : index
      %17 = vector.load %arg3[%c0_9, %c0_10] : memref<16x128xf32, #tpu.memory_space<vmem>>, vector<16x128xf32>
      %cst = arith.constant dense<0.000000e+00> : vector<128x128xf32>
      %18 = tpu.matmul %16, %17, %cst {dimension_numbers = #tpu.dot_dimension_numbers<[1], [0], [0], [1], [0, 0, 1, 1], [], []>} : vector<128x16xf32>, vector<16x128xf32>, vector<128x128xf32> -> vector<128x128xf32>
      %c0_11 = arith.constant 0 : index
      %c0_12 = arith.constant 0 : index
      %19 = vector.load %arg4[%c0_11, %c0_12] : memref<1x128xf32, #tpu.memory_space<vmem>>, vector<1x128xf32>
      %20 = vector.broadcast %19 : vector<1x128xf32> to vector<128x128xf32>
      %21 = arith.addf %18, %20 : vector<128x128xf32>
      %cst_13 = arith.constant 0.000000e+00 : f32
      %22 = vector.broadcast %cst_13 : f32 to vector<128x128xf32>
      %23 = arith.maximumf %21, %22 : vector<128x128xf32>
      %cst_14 = arith.constant 1.000000e+00 : f32
      %24 = vector.broadcast %cst_14 : f32 to vector<1x128xf32>
      %c0_15 = arith.constant 0 : index
      %c0_16 = arith.constant 0 : index
      %25 = vector.load %arg10[%c0_15, %c0_16] : memref<1x128xf32, #tpu.memory_space<vmem>>, vector<1x128xf32>
      %cst_17 = arith.constant dense<0.000000e+00> : vector<1x128xf32>
      %26 = tpu.matmul %24, %23, %cst_17 {dimension_numbers = #tpu.dot_dimension_numbers<[1], [0], [0], [1], [0, 0, 1, 1], [], []>} : vector<1x128xf32>, vector<128x128xf32>, vector<1x128xf32> -> vector<1x128xf32>
      %27 = arith.addf %25, %26 : vector<1x128xf32>
      %c0_18 = arith.constant 0 : index
      %c0_19 = arith.constant 0 : index
      %28 = vector.load %arg10[%c0_18, %c0_19] : memref<1x128xf32, #tpu.memory_space<vmem>>, vector<1x128xf32>
      tpu.vector_store %arg10[%c0_18, %c0_19], %27 {strides = array<i32>} : memref<1x128xf32, #tpu.memory_space<vmem>>, vector<1x128xf32>,
      %c0_20 = arith.constant 0 : index
      %c0_21 = arith.constant 0 : index
      %29 = vector.load %arg11[%c0_20, %c0_21] : memref<1x128xf32, #tpu.memory_space<vmem>>, vector<1x128xf32>
      %30 = arith.mulf %23, %23 : vector<128x128xf32>
      %cst_22 = arith.constant dense<0.000000e+00> : vector<1x128xf32>
      %31 = tpu.matmul %24, %30, %cst_22 {dimension_numbers = #tpu.dot_dimension_numbers<[1], [0], [0], [1], [0, 0, 1, 1], [], []>} : vector<1x128xf32>, vector<128x128xf32>, vector<1x128xf32> -> vector<1x128xf32>
      %32 = arith.addf %29, %31 : vector<1x128xf32>
      %c0_23 = arith.constant 0 : index
      %c0_24 = arith.constant 0 : index
      %33 = vector.load %arg11[%c0_23, %c0_24] : memref<1x128xf32, #tpu.memory_space<vmem>>, vector<1x128xf32>
      tpu.vector_store %arg11[%c0_23, %c0_24], %32 {strides = array<i32>} : memref<1x128xf32, #tpu.memory_space<vmem>>, vector<1x128xf32>,
    } else {
    }
    %c1_i32 = arith.constant 1 : i32
    %8 = arith.cmpi eq, %arg0, %c1_i32 : i32
    %c0_i32_4 = arith.constant 0 : i32
    %9 = arith.cmpi eq, %arg1, %c0_i32_4 : i32
    %10 = arith.andi %8, %9 : i1
    %11 = arith.extui %10 : i1 to i32
    %c0_i32_5 = arith.constant 0 : i32
    %12 = arith.cmpi ne, %11, %c0_i32_5 : i32
    scf.if %12 {
      %c0 = arith.constant 0 : index
      %c0_8 = arith.constant 0 : index
      %16 = vector.load %arg10[%c0, %c0_8] : memref<1x128xf32, #tpu.memory_space<vmem>>, vector<1x128xf32>
      %c0_9 = arith.constant 0 : index
      %c0_10 = arith.constant 0 : index
      %17 = vector.load %arg11[%c0_9, %c0_10] : memref<1x128xf32, #tpu.memory_space<vmem>>, vector<1x128xf32>
      %c0_11 = arith.constant 0 : index
      %c0_12 = arith.constant 0 : index
      %18 = vector.load %arg5[%c0_11, %c0_12] : memref<128x8xf32, #tpu.memory_space<vmem>>, vector<128x8xf32>
      %cst = arith.constant dense<0.000000e+00> : vector<1x8xf32>
      %19 = tpu.matmul %16, %18, %cst {dimension_numbers = #tpu.dot_dimension_numbers<[1], [0], [0], [1], [0, 0, 1, 1], [], []>} : vector<1x128xf32>, vector<128x8xf32>, vector<1x8xf32> -> vector<1x8xf32>
      %c0_13 = arith.constant 0 : index
      %c0_14 = arith.constant 0 : index
      %20 = vector.load %arg5[%c0_13, %c0_14] : memref<128x8xf32, #tpu.memory_space<vmem>>, vector<128x8xf32>
      %cst_15 = arith.constant dense<0.000000e+00> : vector<1x8xf32>
      %21 = tpu.matmul %17, %20, %cst_15 {dimension_numbers = #tpu.dot_dimension_numbers<[1], [0], [0], [1], [0, 0, 1, 1], [], []>} : vector<1x128xf32>, vector<128x8xf32>, vector<1x8xf32> -> vector<1x8xf32>
      %c0_16 = arith.constant 0 : index
      %c0_17 = arith.constant 0 : index
      %22 = vector.load %arg6[%c0_16, %c0_17] : memref<8x128xf32, #tpu.memory_space<vmem>>, vector<8x128xf32>
      %cst_18 = arith.constant dense<0.000000e+00> : vector<1x128xf32>
      %23 = tpu.matmul %19, %22, %cst_18 {dimension_numbers = #tpu.dot_dimension_numbers<[1], [0], [0], [1], [0, 0, 1, 1], [], []>} : vector<1x8xf32>, vector<8x128xf32>, vector<1x128xf32> -> vector<1x128xf32>
      %cst_19 = arith.constant 4.8828125E-4 : f32
      %24 = vector.broadcast %cst_19 : f32 to vector<1x128xf32>
      %25 = arith.mulf %23, %24 : vector<1x128xf32>
      %c0_20 = arith.constant 0 : index
      %c0_21 = arith.constant 0 : index
      %26 = vector.load %arg6[%c0_20, %c0_21] : memref<8x128xf32, #tpu.memory_space<vmem>>, vector<8x128xf32>
      %cst_22 = arith.constant dense<0.000000e+00> : vector<1x128xf32>
      %27 = tpu.matmul %21, %26, %cst_22 {dimension_numbers = #tpu.dot_dimension_numbers<[1], [0], [0], [1], [0, 0, 1, 1], [], []>} : vector<1x8xf32>, vector<8x128xf32>, vector<1x128xf32> -> vector<1x128xf32>
      %cst_23 = arith.constant 4.8828125E-4 : f32
      %28 = vector.broadcast %cst_23 : f32 to vector<1x128xf32>
      %29 = arith.mulf %27, %28 : vector<1x128xf32>
      %30 = arith.mulf %25, %25 : vector<1x128xf32>
      %31 = arith.subf %29, %30 : vector<1x128xf32>
      %cst_24 = arith.constant 0.000000e+00 : f32
      %32 = vector.broadcast %cst_24 : f32 to vector<1x128xf32>
      %33 = arith.maximumf %31, %32 : vector<1x128xf32>
      %c0_25 = arith.constant 0 : index
      %c0_26 = arith.constant 0 : index
      %34 = vector.load %arg7[%c0_25, %c0_26] : memref<1x128xf32, #tpu.memory_space<vmem>>, vector<1x128xf32>
      %cst_27 = arith.constant 9.99999974E-6 : f32
      %35 = vector.broadcast %cst_27 : f32 to vector<1x128xf32>
      %36 = arith.addf %33, %35 : vector<1x128xf32>
      %37 = math.rsqrt %36 : vector<1x128xf32>
      %38 = arith.mulf %34, %37 : vector<1x128xf32>
      %c0_28 = arith.constant 0 : index
      %c0_29 = arith.constant 0 : index
      %39 = vector.load %arg12[%c0_28, %c0_29] : memref<1x128xf32, #tpu.memory_space<vmem>>, vector<1x128xf32>
      tpu.vector_store %arg12[%c0_28, %c0_29], %38 {strides = array<i32>} : memref<1x128xf32, #tpu.memory_space<vmem>>, vector<1x128xf32>,
      %c0_30 = arith.constant 0 : index
      %c0_31 = arith.constant 0 : index
      %40 = vector.load %arg8[%c0_30, %c0_31] : memref<1x128xf32, #tpu.memory_space<vmem>>, vector<1x128xf32>
      %41 = arith.mulf %25, %38 : vector<1x128xf32>
      %42 = arith.subf %40, %41 : vector<1x128xf32>
      %c0_32 = arith.constant 0 : index
      %c0_33 = arith.constant 0 : index
      %43 = vector.load %arg13[%c0_32, %c0_33] : memref<1x128xf32, #tpu.memory_space<vmem>>, vector<1x128xf32>
      tpu.vector_store %arg13[%c0_32, %c0_33], %42 {strides = array<i32>} : memref<1x128xf32, #tpu.memory_space<vmem>>, vector<1x128xf32>,
    } else {
    }
    %c1_i32_6 = arith.constant 1 : i32
    %13 = arith.cmpi eq, %arg0, %c1_i32_6 : i32
    %14 = arith.extui %13 : i1 to i32
    %c0_i32_7 = arith.constant 0 : i32
    %15 = arith.cmpi ne, %14, %c0_i32_7 : i32
    scf.if %15 {
      %c0 = arith.constant 0 : index
      %c0_8 = arith.constant 0 : index
      %16 = vector.load %arg2[%c0, %c0_8] : memref<128x16xf32, #tpu.memory_space<vmem>>, vector<128x16xf32>
      %c0_9 = arith.constant 0 : index
      %c0_10 = arith.constant 0 : index
      %17 = vector.load %arg3[%c0_9, %c0_10] : memref<16x128xf32, #tpu.memory_space<vmem>>, vector<16x128xf32>
      %cst = arith.constant dense<0.000000e+00> : vector<128x128xf32>
      %18 = tpu.matmul %16, %17, %cst {dimension_numbers = #tpu.dot_dimension_numbers<[1], [0], [0], [1], [0, 0, 1, 1], [], []>} : vector<128x16xf32>, vector<16x128xf32>, vector<128x128xf32> -> vector<128x128xf32>
      %c0_11 = arith.constant 0 : index
      %c0_12 = arith.constant 0 : index
      %19 = vector.load %arg4[%c0_11, %c0_12] : memref<1x128xf32, #tpu.memory_space<vmem>>, vector<1x128xf32>
      %20 = vector.broadcast %19 : vector<1x128xf32> to vector<128x128xf32>
      %21 = arith.addf %18, %20 : vector<128x128xf32>
      %cst_13 = arith.constant 0.000000e+00 : f32
      %22 = vector.broadcast %cst_13 : f32 to vector<128x128xf32>
      %23 = arith.maximumf %21, %22 : vector<128x128xf32>
      %c0_14 = arith.constant 0 : index
      %c0_15 = arith.constant 0 : index
      %24 = vector.load %arg12[%c0_14, %c0_15] : memref<1x128xf32, #tpu.memory_space<vmem>>, vector<1x128xf32>
      %25 = vector.broadcast %24 : vector<1x128xf32> to vector<128x128xf32>
      %26 = arith.mulf %23, %25 : vector<128x128xf32>
      %c0_16 = arith.constant 0 : index
      %c0_17 = arith.constant 0 : index
      %27 = vector.load %arg13[%c0_16, %c0_17] : memref<1x128xf32, #tpu.memory_space<vmem>>, vector<1x128xf32>
      %28 = vector.broadcast %27 : vector<1x128xf32> to vector<128x128xf32>
      %29 = arith.addf %26, %28 : vector<128x128xf32>
      %c0_18 = arith.constant 0 : index
      %c0_19 = arith.constant 0 : index
      %30 = vector.load %arg9[%c0_18, %c0_19] : memref<128x128xf32, #tpu.memory_space<vmem>>, vector<128x128xf32>
      tpu.vector_store %arg9[%c0_18, %c0_19], %29 {strides = array<i32>} : memref<128x128xf32, #tpu.memory_space<vmem>>, vector<128x128xf32>,
    } else {
    }
    return
  }
  func.func @transform_0(%arg0: i32, %arg1: i32) -> (i32, i32) {
    %c0_i32 = arith.constant 0 : i32
    %c0_i32_0 = arith.constant 0 : i32
    return %arg1, %c0_i32 : i32, i32
  }
  func.func @transform_1(%arg0: i32, %arg1: i32) -> (i32, i32) {
    %c0_i32 = arith.constant 0 : i32
    %c0_i32_0 = arith.constant 0 : i32
    %c0_i32_1 = arith.constant 0 : i32
    return %c0_i32, %c0_i32_0 : i32, i32
  }
  func.func @transform_2(%arg0: i32, %arg1: i32) -> (i32, i32) {
    %c0_i32 = arith.constant 0 : i32
    %c0_i32_0 = arith.constant 0 : i32
    %c0_i32_1 = arith.constant 0 : i32
    return %c0_i32, %c0_i32_0 : i32, i32
  }
  func.func @transform_3(%arg0: i32, %arg1: i32) -> (i32, i32) {
    %c0_i32 = arith.constant 0 : i32
    %c0_i32_0 = arith.constant 0 : i32
    %c0_i32_1 = arith.constant 0 : i32
    return %c0_i32, %c0_i32_0 : i32, i32
  }
  func.func @transform_4(%arg0: i32, %arg1: i32) -> (i32, i32) {
    %c0_i32 = arith.constant 0 : i32
    %c0_i32_0 = arith.constant 0 : i32
    %c0_i32_1 = arith.constant 0 : i32
    return %c0_i32, %c0_i32_0 : i32, i32
  }
  func.func @transform_5(%arg0: i32, %arg1: i32) -> (i32, i32) {
    %c0_i32 = arith.constant 0 : i32
    %c0_i32_0 = arith.constant 0 : i32
    %c0_i32_1 = arith.constant 0 : i32
    return %c0_i32, %c0_i32_0 : i32, i32
  }
  func.func @transform_6(%arg0: i32, %arg1: i32) -> (i32, i32) {
    %c0_i32 = arith.constant 0 : i32
    %c0_i32_0 = arith.constant 0 : i32
    %c0_i32_1 = arith.constant 0 : i32
    return %c0_i32, %c0_i32_0 : i32, i32
  }
  func.func @transform_7(%arg0: i32, %arg1: i32) -> (i32, i32) {
    %0 = arith.muli %arg1, %arg0 : i32
    %c0_i32 = arith.constant 0 : i32
    %c0_i32_0 = arith.constant 0 : i32
    return %0, %c0_i32 : i32, i32
  }
}

</mosaic_0001>

<bundles_post_ra>
// kernel: tpu_custom_call.1
= control target key start
LH: loop header
LB: loop body
LE: loop exit
PB: predicated region body
PF: predicated region fallthrough
CT: control target
= control target key end

     0   :  { %12 = vsyncpa [#allocation7], 0  ;;  %s2399_s0 = inlined_call_operand.vmem [shape: f32[128,16], index: 0, kind: input, shape index: {}]   ;;  %s2400_s1 = inlined_call_operand.vmem [shape: f32[16,128], index: 1, kind: input, shape index: {}]   ;;  %s2401_s2 = inlined_call_operand.vmem [shape: f32[1,128], index: 2, kind: input, shape index: {}]   ;;  %s2402_s3 = inlined_call_operand.vmem [shape: f32[128,8], index: 3, kind: input, shape index: {}]   ;;  %s2403_s4 = inlined_call_operand.vmem [shape: f32[8,128], index: 4, kind: input, shape index: {}]   ;;  %s2404_s5 = inlined_call_operand.vmem [shape: f32[1,128], index: 5, kind: input, shape index: {}]   ;;  %s2405_s6 = inlined_call_operand.vmem [shape: f32[1,128], index: 6, kind: input, shape index: {}]   ;;  %s2406_s7 = inlined_call_operand.hbm [shape: f32[128,128], index: 7, kind: output, shape index: {}]  }
   0x1   :  { %14 = vsyncpa [#allocation7 + $0x1], 0  ;;  %s2042_s24 = smov 0   ;;  %s2044_s25 = smov 0  }
   0x2   :  { %s2046_s26 = smov 0  }
   0x3 LB: > { %s1416_s27 = sadd.s32 4294967295, %s1989_s26   ;;  %s1417_s28 = sadd.s32 4294967294, %s1989_s26   ;;  %s1989_s26 = sphi %s2046_s26, %s20_s26   ;;  %s1985_s25 = sphi %s2044_s25, %s2409_s25   ;;  %s1981_s24 = sphi %s2042_s24, %s2408_s24  }
   0x4   : > { %s32_s29 = sadd.s32 1, %s1985_s25  ;;  %p1420_p0 = scmp.ge.s32.totalorder %s1989_s26, 1 }
   0x5   : > { %p34_p1 = scmp.ge.s32.totalorder %s32_s29, 2  ;;  %p255_p2 = scmp.lt.s32.totalorder %s1989_s26, 3 }
   0x7   : > { %s2411_s29 = smov (%p34_p1, %s32_s29), 0  ;;  %p256_p3 = pnand %p1420_p0, %p255_p2 }
   0x8   : > { %p295_p4 = scmp.eq.s32.totalorder (!%p256_p3), %s1981_s24, 0 }
   0x9   : > { %259 = sbr.rel (%p256_p3) target bundleno = 1252 (0x4e4), region = 48 }
  0x10   : > { %300 = sbr.rel (!%p295_p4) target bundleno = 23 (0x17), region = 52  ;;  %v1991_v0 = vmov (%p295_p4), 0.0  }
  0x11   : > { %301 = vst [vmem:[#allocation2] sm:$0x1] (%p295_p4), %v1991_v0  ;;  %302 = vst [vmem:[#allocation3] sm:$0x1] (%p295_p4), %v1991_v0 }
  0x17 PF: > { %p1422_p5 = scmp.ne.s32.totalorder %s1981_s24, 0 }
  0x18   : > { %v322_v1 = vld [vmem:[%s2400_s1] sm:$0xff] (!%p1422_p5)  ;;  %v323_v2 = vld [vmem:[%s2400_s1 + $0x8] sm:$0xff] (!%p1422_p5)  ;;  %vm331_vm0 = vcmask (!%p1422_p5), 130048   ;;  %v308_v6 = vld [vmem:[%s2399_s0 + $0x10] sm:$0xff] (!%p1422_p5)  ;;  %v1992_v20 = vmov (!%p1422_p5), 0.0|0.0   ;;  %vm1993_vm1 = vmmov (!%p1422_p5), 0  }
  0x19   : > { %305 = sbr.rel (%p1422_p5) target bundleno = 498 (0x1f2), region = 56  ;;  %v306_v3 = vld [vmem:[%s2399_s0] sm:$0xff] (!%p1422_p5)  ;;  %v1783_v4 = vpack.c.bf16 (!%p1422_p5), %v323_v2, %v322_v1  ;;  %v307_v5 = vld [vmem:[%s2399_s0 + $0x8] sm:$0xff] (!%p1422_p5)  ;;  %v309_v7 = vld [vmem:[%s2399_s0 + $0x18] sm:$0xff] (!%p1422_p5)  ;;  %1787 = vmatprep.subr.bf16.mxu1 (!%p1422_p5), %v1992_v20  ;;  %v1994_v21 = vmov (!%p1422_p5), 0.0  }
  0x1a   : > { %1581 = vmatprep.mubr.msk.f32.mxu0 (!%p1422_p5), %vm331_vm0, %v306_v3  ;;  %v310_v8 = vld [vmem:[%s2399_s0 + $0x20] sm:$0xff] (!%p1422_p5)  ;;  %v311_v9 = vld [vmem:[%s2399_s0 + $0x28] sm:$0xff] (!%p1422_p5)  ;;  %v312_v10 = vld [vmem:[%s2399_s0 + $0x30] sm:$0xff] (!%p1422_p5)  ;;  %1637 = vmatprep.mubr.msk.f32.mxu1 (!%p1422_p5), %vm1993_vm1, %v1994_v21 }
  0x1b   : > { %1784 = vmatprep.subr.bf16.mxu0 (!%p1422_p5), %v1783_v4  ;;  %v313_v11 = vld [vmem:[%s2399_s0 + $0x38] sm:$0xff] (!%p1422_p5)  ;;  %v314_v12 = vld [vmem:[%s2399_s0 + $0x40] sm:$0xff] (!%p1422_p5)  ;;  %v315_v13 = vld [vmem:[%s2399_s0 + $0x48] sm:$0xff] (!%p1422_p5) }
  0x1c   : > { %1786 = vmatpush3.bf16.msra.mxu0 (!%p1422_p5), %v1783_v4  ;;  %v316_v14 = vld [vmem:[%s2399_s0 + $0x50] sm:$0xff] (!%p1422_p5)  ;;  %v317_v15 = vld [vmem:[%s2399_s0 + $0x58] sm:$0xff] (!%p1422_p5)  ;;  %v318_v16 = vld [vmem:[%s2399_s0 + $0x60] sm:$0xff] (!%p1422_p5) }
  0x1d   : > { %v319_v17 = vld [vmem:[%s2399_s0 + $0x68] sm:$0xff] (!%p1422_p5)  ;;  %v320_v18 = vld [vmem:[%s2399_s0 + $0x70] sm:$0xff] (!%p1422_p5)  ;;  %v321_v19 = vld [vmem:[%s2399_s0 + $0x78] sm:$0xff] (!%p1422_p5)  ;;  %1811 = vmatprep.subr.bf16.mxu0 (!%p1422_p5), %v1992_v20 }
  0x1e   : > { %v2141_v22 = vld [vmem:[%s2401_s2] ss:$0 sm:$0xff] (!%p1422_p5) }
  0x1f   : > { %1582 = vmatmul.mubr.msk.f32.vlgmr.msra.gmra.mrb[0].mxu0 (!%p1422_p5), %vm331_vm0, %v307_v5 }
  0x20   : > { %1584 = vmatprep.mubr.msk.f32.mxu0 %vm331_vm0, %v308_v6 }
  0x23   : > { %1585 = vmatmul.mubr.msk.f32.gmra.mrb[2].mxu0 %vm331_vm0, %v309_v7 }
  0x24   : > { %1587 = vmatprep.mubr.msk.f32.mxu0 %vm331_vm0, %v310_v8 }
  0x27   : > { %1588 = vmatmul.mubr.msk.f32.gmra.mrb[4].mxu0 %vm331_vm0, %v311_v9 }
  0x28   : > { %1590 = vmatprep.mubr.msk.f32.mxu0 %vm331_vm0, %v312_v10 }
  0x2b   : > { %1591 = vmatmul.mubr.msk.f32.gmra.mrb[6].mxu0 %vm331_vm0, %v313_v11 }
  0x2c   : > { %1593 = vmatprep.mubr.msk.f32.mxu0 %vm331_vm0, %v314_v12 }
  0x2f   : > { %1594 = vmatmul.mubr.msk.f32.gmra.mrb[8].mxu0 %vm331_vm0, %v315_v13 }
  0x30   : > { %1596 = vmatprep.mubr.msk.f32.mxu0 %vm331_vm0, %v316_v14 }
  0x33   : > { %1597 = vmatmul.mubr.msk.f32.gmra.mrb[10].mxu0 %vm331_vm0, %v317_v15 }
  0x34   : > { %1599 = vmatprep.mubr.msk.f32.mxu0 %vm331_vm0, %v318_v16 }
  0x37   : > { %1600 = vmatmul.mubr.msk.f32.gmra.mrb[12].mxu0 %vm331_vm0, %v319_v17 }
  0x38   : > { %1602 = vmatprep.mubr.msk.f32.mxu0 %vm331_vm0, %v320_v18 }
  0x3b   : > { %1603 = vmatmul.mubr.msk.f32.gmra.mrb[14].mxu0 %vm331_vm0, %v321_v19 }
  0x3c   : > { %1672 = vmatprep.mubr.msk.f32.mxu0 %vm1993_vm1, %v1994_v21 }
  0xf2   : > { %v1583_v23 = vpop.f32.mrb[0].mxu0 }
  0xf3   : > { %v452_v24 = vadd.f32 %v1583_v23, %v2141_v22  ;;  %v446_v25 = vpop.f32.mrb[1].mxu0 }
  0xf4   : > { %v447_v26 = vadd.f32 %v2141_v22, %v446_v25 }
  0xf5   : > { %v526_v27 = vmax.f32 %v452_v24, 0.0 }
  0xf6   : > { %v525_v28 = vmax.f32 %v447_v26, 0.0  ;;  %v1586_v29 = vpop.f32.mrb[2].mxu0 }
  0xf7   : > { %v616_v30 = vmul.f32 %v526_v27, %v526_v27  ;;  %v462_v31 = vadd.f32 %v1586_v29, %v2141_v22  ;;  %v456_v32 = vpop.f32.mrb[3].mxu0 }
  0xf8   : > { %v615_v33 = vmul.f32 %v525_v28, %v525_v28  ;;  %v457_v34 = vadd.f32 %v2141_v22, %v456_v32  ;;  %v1788_v35 = vpack.c.bf16 %v526_v27, %v525_v28 }
  0xf9   : > { %v528_v36 = vmax.f32 %v462_v31, 0.0 }
  0xfa   : > { %v1812_v37 = vpack.c.bf16 %v616_v30, %v615_v33  ;;  %v527_v38 = vmax.f32 %v457_v34, 0.0  ;;  %v1589_v39 = vpop.f32.mrb[4].mxu0  ;;  %1789 = vmatpush3.bf16.msra.mxu1 %v1788_v35 }
  0xfb   : > { %v618_v40 = vmul.f32 %v528_v36, %v528_v36  ;;  %v472_v41 = vadd.f32 %v1589_v39, %v2141_v22  ;;  %v466_v42 = vpop.f32.mrb[5].mxu0  ;;  %1790 = vmatprep.subr.bf16.mxu1 %v1992_v20 }
  0xfc   : > { %v1791_v43 = vpack.c.bf16 %v528_v36, %v527_v38  ;;  %v617_v44 = vmul.f32 %v527_v38, %v527_v38  ;;  %v467_v45 = vadd.f32 %v2141_v22, %v466_v42  ;;  %1813 = vmatpush3.bf16.msra.mxu0 %v1812_v37 }
  0xfd   : > { %v530_v46 = vmax.f32 %v472_v41, 0.0  ;;  %1814 = vmatprep.subr.bf16.mxu0 %v1992_v20  ;;  %v1995_v41 = vmov 1.0  }
  0xfe   : > { %v1815_v47 = vpack.c.bf16 %v618_v40, %v617_v44  ;;  %v529_v48 = vmax.f32 %v467_v45, 0.0  ;;  %v1592_v49 = vpop.f32.mrb[6].mxu0  ;;  %1792 = vmatpush3.bf16.msra.mxu1 %v1791_v43  ;;  %v614_v43 = vld [vmem:[#allocation3] sm:$0x1] }
  0xff   : > { %v620_v50 = vmul.f32 %v530_v46, %v530_v46  ;;  %v482_v51 = vadd.f32 %v1592_v49, %v2141_v22  ;;  %v476_v52 = vpop.f32.mrb[7].mxu0  ;;  %1793 = vmatprep.subr.bf16.mxu1 %v1992_v20 }
 0x100   : > { %v1794_v53 = vpack.c.bf16 %v530_v46, %v529_v48  ;;  %v619_v54 = vmul.f32 %v529_v48, %v529_v48  ;;  %v477_v55 = vadd.f32 %v2141_v22, %v476_v52  ;;  %1816 = vmatpush3.bf16.msra.mxu0 %v1815_v47 }
 0x101   : > { %v532_v56 = vmax.f32 %v482_v51, 0.0  ;;  %1817 = vmatprep.subr.bf16.mxu0 %v1992_v20 }
 0x102   : > { %v1818_v57 = vpack.c.bf16 %v620_v50, %v619_v54  ;;  %v531_v58 = vmax.f32 %v477_v55, 0.0  ;;  %v1595_v59 = vpop.f32.mrb[8].mxu0  ;;  %1795 = vmatpush3.bf16.msra.mxu1 %v1794_v53 }
 0x103   : > { %v622_v60 = vmul.f32 %v532_v56, %v532_v56  ;;  %v492_v61 = vadd.f32 %v1595_v59, %v2141_v22  ;;  %v486_v62 = vpop.f32.mrb[9].mxu0  ;;  %1796 = vmatprep.subr.bf16.mxu1 %v1992_v20 }
 0x104   : > { %v1797_v63 = vpack.c.bf16 %v532_v56, %v531_v58  ;;  %v621_v0 = vmul.f32 %v531_v58, %v531_v58  ;;  %v487_v1 = vadd.f32 %v2141_v22, %v486_v62  ;;  %1819 = vmatpush3.bf16.msra.mxu0 %v1818_v57 }
 0x105   : > { %v534_v2 = vmax.f32 %v492_v61, 0.0  ;;  %1820 = vmatprep.subr.bf16.mxu0 %v1992_v20 }
 0x106   : > { %v1821_v3 = vpack.c.bf16 %v622_v60, %v621_v0  ;;  %v533_v4 = vmax.f32 %v487_v1, 0.0  ;;  %v1598_v5 = vpop.f32.mrb[10].mxu0  ;;  %1798 = vmatpush3.bf16.msra.mxu1 %v1797_v63 }
 0x107   : > { %v624_v6 = vmul.f32 %v534_v2, %v534_v2  ;;  %v502_v7 = vadd.f32 %v1598_v5, %v2141_v22  ;;  %v496_v8 = vpop.f32.mrb[11].mxu0  ;;  %1799 = vmatprep.subr.bf16.mxu1 %v1992_v20 }
 0x108   : > { %v1800_v9 = vpack.c.bf16 %v534_v2, %v533_v4  ;;  %v623_v10 = vmul.f32 %v533_v4, %v533_v4  ;;  %v497_v11 = vadd.f32 %v2141_v22, %v496_v8  ;;  %1822 = vmatpush3.bf16.msra.mxu0 %v1821_v3 }
 0x109   : > { %v536_v12 = vmax.f32 %v502_v7, 0.0  ;;  %1823 = vmatprep.subr.bf16.mxu0 %v1992_v20 }
 0x10a   : > { %v1824_v13 = vpack.c.bf16 %v624_v6, %v623_v10  ;;  %v535_v14 = vmax.f32 %v497_v11, 0.0  ;;  %v1601_v15 = vpop.f32.mrb[12].mxu0  ;;  %1801 = vmatpush3.bf16.msra.mxu1 %v1800_v9 }
 0x10b   : > { %v626_v16 = vmul.f32 %v536_v12, %v536_v12  ;;  %v512_v17 = vadd.f32 %v1601_v15, %v2141_v22  ;;  %v506_v18 = vpop.f32.mrb[13].mxu0  ;;  %1802 = vmatprep.subr.bf16.mxu1 %v1992_v20 }
 0x10c   : > { %v1803_v19 = vpack.c.bf16 %v536_v12, %v535_v14  ;;  %v625_v21 = vmul.f32 %v535_v14, %v535_v14  ;;  %v507_v23 = vadd.f32 %v2141_v22, %v506_v18  ;;  %1825 = vmatpush3.bf16.msra.mxu0 %v1824_v13 }
 0x10d   : > { %v538_v24 = vmax.f32 %v512_v17, 0.0  ;;  %1826 = vmatprep.subr.bf16.mxu0 %v1992_v20 }
 0x10e   : > { %v1827_v25 = vpack.c.bf16 %v626_v16, %v625_v21  ;;  %v537_v26 = vmax.f32 %v507_v23, 0.0  ;;  %v1604_v27 = vpop.f32.mrb[14].mxu0  ;;  %1804 = vmatpush3.bf16.msra.mxu1 %v1803_v19 }
 0x10f   : > { %v628_v28 = vmul.f32 %v538_v24, %v538_v24  ;;  %v522_v29 = vadd.f32 %v1604_v27, %v2141_v22  ;;  %v516_v30 = vpop.f32.mrb[15].mxu0  ;;  %1805 = vmatprep.subr.bf16.mxu1 %v1992_v20 }
 0x110   : > { %v1806_v31 = vpack.c.bf16 %v538_v24, %v537_v26  ;;  %v627_v32 = vmul.f32 %v537_v26, %v537_v26  ;;  %v517_v33 = vadd.f32 %v2141_v22, %v516_v30  ;;  %1828 = vmatpush3.bf16.msra.mxu0 %v1827_v25  ;;  %v541_v22 = vld [vmem:[#allocation2] sm:$0x1] }
 0x111   : > { %v540_v34 = vmax.f32 %v522_v29, 0.0  ;;  %1829 = vmatprep.subr.bf16.mxu0 %v1992_v20 }
 0x112   : > { %v1830_v35 = vpack.c.bf16 %v628_v28, %v627_v32  ;;  %v539_v36 = vmax.f32 %v517_v33, 0.0  ;;  %1807 = vmatpush3.bf16.msra.mxu1 %v1806_v31 }
 0x113   : > { %v630_v37 = vmul.f32 %v540_v34, %v540_v34  ;;  %1808 = vmatprep.subr.bf16.mxu1 %v1992_v20 }
 0x114   : > { %v1809_v38 = vpack.c.bf16 %v540_v34, %v539_v36  ;;  %v629_v39 = vmul.f32 %v539_v36, %v539_v36  ;;  %1831 = vmatpush3.bf16.msra.mxu0 %v1830_v35 }
 0x115   : > { %1832 = vmatprep.subr.bf16.mxu0 %v1992_v20 }
 0x116   : > { %v1833_v40 = vpack.c.bf16 %v630_v37, %v629_v39  ;;  %1810 = vmatpush3.bf16.msra.mxu1 %v1809_v38 }
 0x118   : > { %1834 = vmatpush3.bf16.msra.mxu0 %v1833_v40 }
 0x119   : > { %1638 = vmatmul.mubr.f32.vlgmr.msra.gmra.mrb[0].mxu1 %v1995_v41 }
 0x11b   : > { %1673 = vmatmul.mubr.f32.vlgmr.msra.gmra.mrb[16].mxu0 %v1995_v41 }
 0x1ec   : > { %v608_v42 = vpop.f32.mrb[0].mxu1 }
 0x1ed   : > { %v612_v44 = vadd.f32 %v608_v42, %v541_v22  ;;  %v1639_v45 = vpop.f32.mrb[1].mxu1 }
 0x1ee   : > { %v697_v46 = vpop.f32.mrb[16].mxu0 }
 0x1ef   : > { %613 = vst [vmem:[#allocation2] sm:$0x1] %v612_v44  ;;  %v701_v47 = vadd.f32 %v697_v46, %v614_v43  ;;  %v1674_v48 = vpop.f32.mrb[17].mxu0 }
 0x1f1   : > { %702 = vst [vmem:[#allocation3] sm:$0x1] %v701_v47 }
 0x1f2 PF: > { %p703_p6 = scmp.eq.s32.totalorder %s1981_s24, 1 }
 0x1f3   : > { %v710_v20 = vld [vmem:[%s2402_s3] sm:$0xff] (%p703_p6)  ;;  %v711_v49 = vld [vmem:[%s2402_s3 + $0x8] sm:$0xff] (%p703_p6)  ;;  %v712_v50 = vld [vmem:[%s2402_s3 + $0x10] sm:$0xff] (%p703_p6)  ;;  %v1996_v51 = vmov (%p703_p6), 0.0|0.0   ;;  %vm1997_vm2 = vmmov (%p703_p6), 0   ;;  %v1998_v54 = vmov (%p703_p6), 0.0  }
 0x1f4   : > { %707 = sbr.rel (!%p703_p6) target bundleno = 985 (0x3d9), region = 60  ;;  %1835 = vmatprep.subr.bf16.mxu0 (%p703_p6), %v1996_v51  ;;  %v1836_v52 = vpack.c.bf16 (%p703_p6), %v711_v49, %v710_v20  ;;  %1859 = vmatprep.subr.bf16.mxu1 (%p703_p6), %v1996_v51  ;;  %v713_v53 = vld [vmem:[%s2402_s3 + $0x18] sm:$0xff] (%p703_p6)  ;;  %v714_v56 = vld [vmem:[%s2402_s3 + $0x20] sm:$0xff] (%p703_p6)  ;;  %v715_v57 = vld [vmem:[%s2402_s3 + $0x28] sm:$0xff] (%p703_p6)  ;;  %vm867_vm3 = vcmask (%p703_p6), 64512  }
 0x1f5   : > { %1707 = vmatprep.mubr.msk.f32.mxu0 (%p703_p6), %vm1997_vm2, %v1998_v54  ;;  %1742 = vmatprep.mubr.msk.f32.mxu1 (%p703_p6), %vm1997_vm2, %v1998_v54  ;;  %v1839_v55 = vpack.c.bf16 (%p703_p6), %v713_v53, %v712_v50  ;;  %v1842_v58 = vpack.c.bf16 (%p703_p6), %v715_v57, %v714_v56  ;;  %v716_v59 = vld [vmem:[%s2402_s3 + $0x30] sm:$0xff] (%p703_p6)  ;;  %v717_v60 = vld [vmem:[%s2402_s3 + $0x38] sm:$0xff] (%p703_p6)  ;;  %v718_v62 = vld [vmem:[%s2402_s3 + $0x40] sm:$0xff] (%p703_p6) }
 0x1f6   : > { %1837 = vmatpush3.bf16.msra.mxu0 (%p703_p6), %v1836_v52  ;;  %1861 = vmatpush3.bf16.msra.mxu1 (%p703_p6), %v1836_v52  ;;  %v1845_v61 = vpack.c.bf16 (%p703_p6), %v717_v60, %v716_v59  ;;  %v719_v63 = vld [vmem:[%s2402_s3 + $0x48] sm:$0xff] (%p703_p6)  ;;  %v720_v1 = vld [vmem:[%s2402_s3 + $0x50] sm:$0xff] (%p703_p6)  ;;  %v721_v2 = vld [vmem:[%s2402_s3 + $0x58] sm:$0xff] (%p703_p6) }
 0x1f7   : > { %1838 = vmatprep.subr.bf16.mxu0 (%p703_p6), %v1996_v51  ;;  %1862 = vmatprep.subr.bf16.mxu1 (%p703_p6), %v1996_v51  ;;  %v1848_v0 = vpack.c.bf16 (%p703_p6), %v719_v63, %v718_v62  ;;  %v1851_v3 = vpack.c.bf16 (%p703_p6), %v721_v2, %v720_v1  ;;  %v722_v4 = vld [vmem:[%s2402_s3 + $0x60] sm:$0xff] (%p703_p6)  ;;  %v723_v5 = vld [vmem:[%s2402_s3 + $0x68] sm:$0xff] (%p703_p6)  ;;  %v724_v7 = vld [vmem:[%s2402_s3 + $0x70] sm:$0xff] (%p703_p6) }
 0x1f8   : > { %v1854_v6 = vpack.c.bf16 (%p703_p6), %v723_v5, %v722_v4  ;;  %v725_v8 = vld [vmem:[%s2402_s3 + $0x78] sm:$0xff] (%p703_p6)  ;;  %v708_v10 = vld [vmem:[#allocation2] sm:$0x1] (%p703_p6)  ;;  %v709_v11 = vld [vmem:[#allocation3] sm:$0x1] (%p703_p6) }
 0x1f9   : > { %v1857_v9 = vpack.c.bf16 (%p703_p6), %v725_v8, %v724_v7  ;;  %v866_v12 = vld [vmem:[%s2403_s4] sm:$0xff] (%p703_p6) }
 0x1fa   : > { %1840 = vmatpush3.bf16.msra.mxu0 (%p703_p6), %v1839_v55  ;;  %1864 = vmatpush3.bf16.msra.mxu1 (%p703_p6), %v1839_v55  ;;  %v1019_v29 = vld [vmem:[%s2404_s5] sm:$0x1] (%p703_p6) }
 0x1fb   : > { %1841 = vmatprep.subr.bf16.mxu0 %v1996_v51  ;;  %1865 = vmatprep.subr.bf16.mxu1 %v1996_v51  ;;  %v1024_v32 = vld [vmem:[%s2405_s6] sm:$0x1] }
 0x1fe   : > { %1843 = vmatpush3.bf16.msra.mxu0 %v1842_v58  ;;  %1867 = vmatpush3.bf16.msra.mxu1 %v1842_v58 }
 0x1ff   : > { %1844 = vmatprep.subr.bf16.mxu0 %v1996_v51  ;;  %1868 = vmatprep.subr.bf16.mxu1 %v1996_v51 }
 0x202   : > { %1846 = vmatpush3.bf16.msra.mxu0 %v1845_v61  ;;  %1870 = vmatpush3.bf16.msra.mxu1 %v1845_v61 }
 0x203   : > { %1847 = vmatprep.subr.bf16.mxu0 %v1996_v51  ;;  %1871 = vmatprep.subr.bf16.mxu1 %v1996_v51 }
 0x206   : > { %1849 = vmatpush3.bf16.msra.mxu0 %v1848_v0  ;;  %1873 = vmatpush3.bf16.msra.mxu1 %v1848_v0 }
 0x207   : > { %1850 = vmatprep.subr.bf16.mxu0 %v1996_v51  ;;  %1874 = vmatprep.subr.bf16.mxu1 %v1996_v51 }
 0x20a   : > { %1852 = vmatpush3.bf16.msra.mxu0 %v1851_v3  ;;  %1876 = vmatpush3.bf16.msra.mxu1 %v1851_v3 }
 0x20b   : > { %1853 = vmatprep.subr.bf16.mxu0 %v1996_v51  ;;  %1877 = vmatprep.subr.bf16.mxu1 %v1996_v51 }
 0x20e   : > { %1855 = vmatpush3.bf16.msra.mxu0 %v1854_v6  ;;  %1879 = vmatpush3.bf16.msra.mxu1 %v1854_v6 }
 0x20f   : > { %1856 = vmatprep.subr.bf16.mxu0 %v1996_v51  ;;  %1880 = vmatprep.subr.bf16.mxu1 %v1996_v51 }
 0x212   : > { %1858 = vmatpush3.bf16.msra.mxu0 %v1857_v9  ;;  %1882 = vmatpush3.bf16.msra.mxu1 %v1857_v9 }
 0x213   : > { %1745 = vmatprep.subr.mxu0 %v1998_v54  ;;  %1750 = vmatprep.subr.mxu1 %v1998_v54 }
 0x215   : > { %1708 = vmatmul.mubr.f32.vlgmr.msra.gmra.mrb[0].mxu0 %v708_v10  ;;  %1743 = vmatmul.mubr.f32.vlgmr.msra.gmra.mrb[0].mxu1 %v709_v11 }
 0x216   : > { %1746 = vmatpush3.msra.mxu0 %v866_v12  ;;  %1751 = vmatpush3.msra.mxu1 %v866_v12 }
 0x217   : > { %1747 = vmatprep.mubr.msk.f32.mxu0 %vm1997_vm2, %v1998_v54  ;;  %1752 = vmatprep.mubr.msk.f32.mxu1 %vm1997_vm2, %v1998_v54 }
 0x2e8   : > { %v792_v13 = vpop.f32.mrb[0].mxu0  ;;  %v862_v14 = vpop.f32.mrb[0].mxu1 }
 0x2e9   : > { %v1709_v15 = vpop.f32.mrb[1].mxu0  ;;  %1748 = vmatmul.mubr.msk.f32.vlgmr.msra.gmra.mrb[2].mxu0 %vm867_vm3, %v792_v13  ;;  %v1744_v16 = vpop.f32.mrb[1].mxu1  ;;  %1753 = vmatmul.mubr.msk.f32.vlgmr.msra.gmra.mrb[2].mxu1 %vm867_vm3, %v862_v14 }
 0x3bc   : > { %v937_v17 = vpop.f32.mrb[2].mxu0  ;;  %v1011_v18 = vpop.f32.mrb[2].mxu1 }
 0x3bd   : > { %v941_v19 = vmul.f32 0.00048828125, %v937_v17  ;;  %v1749_v21 = vpop.f32.mrb[3].mxu0  ;;  %v1015_v23 = vmul.f32 0.00048828125, %v1011_v18  ;;  %v1754_v24 = vpop.f32.mrb[3].mxu1 }
 0x3bf   : > { %v1016_v25 = vmul.f32 %v941_v19, %v941_v19 }
 0x3c1   : > { %v1017_v26 = vsub.f32 %v1015_v23, %v1016_v25 }
 0x3c3   : > { %v1018_v27 = vmax.f32 %v1017_v26, 0.0 }
 0x3c5   : > { %v1020_v28 = vadd.f32 1e-05, %v1018_v27 }
 0x3c7   : > { %1935 = vrsqrt.f32 %v1020_v28 }
 0x3d1   : > { %v1936_v30 = vpop.eup %1935 }
 0x3d2   : > { %v1022_v31 = vmul.f32 %v1936_v30, %v1019_v29 }
 0x3d4   : > { %1023 = vst [vmem:[#allocation4] sm:$0x1] %v1022_v31  ;;  %v1025_v33 = vmul.f32 %v1022_v31, %v941_v19 }
 0x3d6   : > { %v1026_v34 = vsub.f32 %v1024_v32, %v1025_v33 }
 0x3d8   : > { %1027 = vst [vmem:[#allocation5] sm:$0x1] %v1026_v34 }
 0x3d9 PF: > { %p1443_p7 = scmp.ne.s32.totalorder %s1981_s24, 1 }
 0x3da   : > { %v1047_v35 = vld [vmem:[%s2400_s1] sm:$0xff] (!%p1443_p7)  ;;  %v1048_v36 = vld [vmem:[%s2400_s1 + $0x8] sm:$0xff] (!%p1443_p7)  ;;  %vm1056_vm4 = vcmask (!%p1443_p7), 130048   ;;  %v1033_v22 = vld [vmem:[%s2399_s0 + $0x10] sm:$0xff] (!%p1443_p7) }
 0x3db   : > { %1030 = sbr.rel (%p1443_p7) target bundleno = 1228 (0x4cc), region = 64  ;;  %v1031_v37 = vld [vmem:[%s2399_s0] sm:$0xff] (!%p1443_p7)  ;;  %v1883_v38 = vpack.c.bf16 (!%p1443_p7), %v1048_v36, %v1047_v35  ;;  %v1032_v40 = vld [vmem:[%s2399_s0 + $0x8] sm:$0xff] (!%p1443_p7)  ;;  %v1041_v42 = vld [vmem:[%s2399_s0 + $0x50] sm:$0xff] (!%p1443_p7) }
 0x3dc   : > { %1759 = vmatprep.mubr.msk.f32.mxu0 (!%p1443_p7), %vm1056_vm4, %v1031_v37  ;;  %v1039_v39 = vld [vmem:[%s2399_s0 + $0x40] sm:$0xff] (!%p1443_p7)  ;;  %v1040_v41 = vld [vmem:[%s2399_s0 + $0x48] sm:$0xff] (!%p1443_p7)  ;;  %v1034_v43 = vld [vmem:[%s2399_s0 + $0x18] sm:$0xff] (!%p1443_p7) }
 0x3dd   : > { %1771 = vmatprep.mubr.msk.f32.mxu1 (!%p1443_p7), %vm1056_vm4, %v1039_v39  ;;  %1884 = vmatprep.subr.bf16.mxu0 (!%p1443_p7), %v1883_v38  ;;  %v1042_v44 = vld [vmem:[%s2399_s0 + $0x58] sm:$0xff] (!%p1443_p7)  ;;  %v1035_v45 = vld [vmem:[%s2399_s0 + $0x20] sm:$0xff] (!%p1443_p7)  ;;  %v1036_v47 = vld [vmem:[%s2399_s0 + $0x28] sm:$0xff] (!%p1443_p7) }
 0x3de   : > { %1887 = vmatprep.subr.bf16.mxu1 (!%p1443_p7), %v1883_v38  ;;  %1886 = vmatpush3.bf16.msra.mxu0 (!%p1443_p7), %v1883_v38  ;;  %v1043_v46 = vld [vmem:[%s2399_s0 + $0x60] sm:$0xff] (!%p1443_p7)  ;;  %v1044_v48 = vld [vmem:[%s2399_s0 + $0x68] sm:$0xff] (!%p1443_p7)  ;;  %v1037_v20 = vld [vmem:[%s2399_s0 + $0x30] sm:$0xff] (!%p1443_p7) }
 0x3df   : > { %1888 = vmatpush3.bf16.msra.mxu1 (!%p1443_p7), %v1883_v38  ;;  %v1045_v49 = vld [vmem:[%s2399_s0 + $0x70] sm:$0xff] (!%p1443_p7)  ;;  %v1038_v50 = vld [vmem:[%s2399_s0 + $0x38] sm:$0xff] (!%p1443_p7)  ;;  %v2309_v52 = vld [vmem:[%s2401_s2] ss:$0 sm:$0xff] (!%p1443_p7) }
 0x3e0   : > { %v1046_v51 = vld [vmem:[%s2399_s0 + $0x78] sm:$0xff] (!%p1443_p7)  ;;  %v2313_v59 = vld [vmem:[#allocation4] ss:$0 sm:$0xff] (!%p1443_p7)  ;;  %v2317_v0 = vld [vmem:[#allocation5] ss:$0 sm:$0xff] (!%p1443_p7) }
 0x3e1   : > { %1760 = vmatmul.mubr.msk.f32.vlgmr.msra.gmra.mrb[0].mxu0 (!%p1443_p7), %vm1056_vm4, %v1032_v40 }
 0x3e2   : > { %1772 = vmatmul.mubr.msk.f32.vlgmr.msra.gmra.mrb[0].mxu1 %vm1056_vm4, %v1040_v41  ;;  %1762 = vmatprep.mubr.msk.f32.mxu0 %vm1056_vm4, %v1033_v22 }
 0x3e3   : > { %1774 = vmatprep.mubr.msk.f32.mxu1 %vm1056_vm4, %v1041_v42 }
 0x3e5   : > { %1763 = vmatmul.mubr.msk.f32.gmra.mrb[2].mxu0 %vm1056_vm4, %v1034_v43 }
 0x3e6   : > { %1775 = vmatmul.mubr.msk.f32.gmra.mrb[2].mxu1 %vm1056_vm4, %v1042_v44  ;;  %1765 = vmatprep.mubr.msk.f32.mxu0 %vm1056_vm4, %v1035_v45 }
 0x3e7   : > { %1777 = vmatprep.mubr.msk.f32.mxu1 %vm1056_vm4, %v1043_v46 }
 0x3e9   : > { %1766 = vmatmul.mubr.msk.f32.gmra.mrb[4].mxu0 %vm1056_vm4, %v1036_v47 }
 0x3ea   : > { %1778 = vmatmul.mubr.msk.f32.gmra.mrb[4].mxu1 %vm1056_vm4, %v1044_v48  ;;  %1768 = vmatprep.mubr.msk.f32.mxu0 %vm1056_vm4, %v1037_v20 }
 0x3eb   : > { %1780 = vmatprep.mubr.msk.f32.mxu1 %vm1056_vm4, %v1045_v49 }
 0x3ed   : > { %1769 = vmatmul.mubr.msk.f32.gmra.mrb[6].mxu0 %vm1056_vm4, %v1038_v50 }
 0x3ee   : > { %1781 = vmatmul.mubr.msk.f32.gmra.mrb[6].mxu1 %vm1056_vm4, %v1046_v51 }
 0x4b4   : > { %v1761_v53 = vpop.f32.mrb[0].mxu0 }
 0x4b5   : > { %v1773_v54 = vpop.f32.mrb[0].mxu1  ;;  %v1177_v55 = vadd.f32 %v1761_v53, %v2309_v52  ;;  %v1171_v57 = vpop.f32.mrb[1].mxu0 }
 0x4b6   : > { %v1217_v56 = vadd.f32 %v1773_v54, %v2309_v52  ;;  %v1211_v58 = vpop.f32.mrb[1].mxu1  ;;  %v1172_v60 = vadd.f32 %v2309_v52, %v1171_v57 }
 0x4b7   : > { %v1212_v61 = vadd.f32 %v2309_v52, %v1211_v58  ;;  %v1251_v62 = vmax.f32 %v1177_v55, 0.0 }
 0x4b8   : > { %v1259_v63 = vmax.f32 %v1217_v56, 0.0  ;;  %v1250_v1 = vmax.f32 %v1172_v60, 0.0  ;;  %v1764_v3 = vpop.f32.mrb[2].mxu0 }
 0x4b9   : > { %v1258_v2 = vmax.f32 %v1212_v61, 0.0  ;;  %v1776_v4 = vpop.f32.mrb[2].mxu1  ;;  %v1274_v5 = vmul.f32 %v2313_v59, %v1251_v62  ;;  %v1187_v7 = vadd.f32 %v1764_v3, %v2309_v52  ;;  %v1181_v9 = vpop.f32.mrb[3].mxu0 }
 0x4ba   : > { %v1282_v6 = vmul.f32 %v2313_v59, %v1259_v63  ;;  %v1227_v8 = vadd.f32 %v1776_v4, %v2309_v52  ;;  %v1221_v10 = vpop.f32.mrb[3].mxu1  ;;  %v1273_v11 = vmul.f32 %v2313_v59, %v1250_v1  ;;  %v1182_v13 = vadd.f32 %v2309_v52, %v1181_v9 }
 0x4bb   : > { %v1281_v12 = vmul.f32 %v2313_v59, %v1258_v2  ;;  %v1222_v14 = vadd.f32 %v2309_v52, %v1221_v10  ;;  %v1297_v15 = vadd.f32 %v2317_v0, %v1274_v5  ;;  %v1253_v17 = vmax.f32 %v1187_v7, 0.0 }
 0x4bc   : > { %v1305_v16 = vadd.f32 %v2317_v0, %v1282_v6  ;;  %v1261_v18 = vmax.f32 %v1227_v8, 0.0  ;;  %v1296_v19 = vadd.f32 %v2317_v0, %v1273_v11  ;;  %v1252_v23 = vmax.f32 %v1182_v13, 0.0  ;;  %v1767_v25 = vpop.f32.mrb[4].mxu0 }
 0x4bd   : > { %v1304_v21 = vadd.f32 %v2317_v0, %v1281_v12  ;;  %v1260_v24 = vmax.f32 %v1222_v14, 0.0  ;;  %v1779_v26 = vpop.f32.mrb[4].mxu1  ;;  %1313 = vst [vmem:[#allocation6 + $0x8] sm:$0xff] %v1297_v15  ;;  %v1276_v27 = vmul.f32 %v2313_v59, %v1253_v17  ;;  %v1197_v29 = vadd.f32 %v1767_v25, %v2309_v52  ;;  %v1191_v31 = vpop.f32.mrb[5].mxu0 }
 0x4be   : > { %1321 = vst [vmem:[#allocation6 + $0x48] sm:$0xff] %v1305_v16  ;;  %v1284_v28 = vmul.f32 %v2313_v59, %v1261_v18  ;;  %v1237_v30 = vadd.f32 %v1779_v26, %v2309_v52  ;;  %v1231_v32 = vpop.f32.mrb[5].mxu1  ;;  %1312 = vst [vmem:[#allocation6] sm:$0xff] %v1296_v19  ;;  %v1275_v33 = vmul.f32 %v2313_v59, %v1252_v23 }
 0x4bf   : > { %1320 = vst [vmem:[#allocation6 + $0x40] sm:$0xff] %v1304_v21  ;;  %v1283_v34 = vmul.f32 %v2313_v59, %v1260_v24  ;;  %v1192_v35 = vadd.f32 %v2309_v52, %v1191_v31  ;;  %v1232_v36 = vadd.f32 %v2309_v52, %v1231_v32  ;;  %v1299_v37 = vadd.f32 %v2317_v0, %v1276_v27 }
 0x4c0   : > { %v1307_v38 = vadd.f32 %v2317_v0, %v1284_v28  ;;  %v1255_v39 = vmax.f32 %v1197_v29, 0.0  ;;  %v1263_v40 = vmax.f32 %v1237_v30, 0.0  ;;  %v1298_v41 = vadd.f32 %v2317_v0, %v1275_v33  ;;  %v1770_v44 = vpop.f32.mrb[6].mxu0 }
 0x4c1   : > { %v1306_v22 = vadd.f32 %v2317_v0, %v1283_v34  ;;  %v1254_v42 = vmax.f32 %v1192_v35, 0.0  ;;  %v1262_v43 = vmax.f32 %v1232_v36, 0.0  ;;  %v1782_v45 = vpop.f32.mrb[6].mxu1  ;;  %1315 = vst [vmem:[#allocation6 + $0x18] sm:$0xff] %v1299_v37  ;;  %v1207_v48 = vadd.f32 %v1770_v44, %v2309_v52  ;;  %v1201_v49 = vpop.f32.mrb[7].mxu0 }
 0x4c2   : > { %1323 = vst [vmem:[#allocation6 + $0x58] sm:$0xff] %v1307_v38  ;;  %v1278_v46 = vmul.f32 %v2313_v59, %v1255_v39  ;;  %v1286_v47 = vmul.f32 %v2313_v59, %v1263_v40  ;;  %v1247_v20 = vadd.f32 %v1782_v45, %v2309_v52  ;;  %v1241_v50 = vpop.f32.mrb[7].mxu1  ;;  %1314 = vst [vmem:[#allocation6 + $0x10] sm:$0xff] %v1298_v41 }
 0x4c3   : > { %1322 = vst [vmem:[#allocation6 + $0x50] sm:$0xff] %v1306_v22  ;;  %v1277_v51 = vmul.f32 %v2313_v59, %v1254_v42  ;;  %v1285_v53 = vmul.f32 %v2313_v59, %v1262_v43  ;;  %v1202_v54 = vadd.f32 %v2309_v52, %v1201_v49  ;;  %v1242_v55 = vadd.f32 %v2309_v52, %v1241_v50 }
 0x4c4   : > { %v1301_v56 = vadd.f32 %v2317_v0, %v1278_v46  ;;  %v1309_v57 = vadd.f32 %v2317_v0, %v1286_v47  ;;  %v1257_v58 = vmax.f32 %v1207_v48, 0.0  ;;  %v1265_v60 = vmax.f32 %v1247_v20, 0.0 }
 0x4c5   : > { %v1300_v61 = vadd.f32 %v2317_v0, %v1277_v51  ;;  %v1308_v62 = vadd.f32 %v2317_v0, %v1285_v53  ;;  %v1256_v63 = vmax.f32 %v1202_v54, 0.0  ;;  %v1264_v1 = vmax.f32 %v1242_v55, 0.0 }
 0x4c6   : > { %1317 = vst [vmem:[#allocation6 + $0x28] sm:$0xff] %v1301_v56  ;;  %1325 = vst [vmem:[#allocation6 + $0x68] sm:$0xff] %v1309_v57  ;;  %v1280_v2 = vmul.f32 %v2313_v59, %v1257_v58  ;;  %v1288_v3 = vmul.f32 %v2313_v59, %v1265_v60 }
 0x4c7   : > { %1316 = vst [vmem:[#allocation6 + $0x20] sm:$0xff] %v1300_v61  ;;  %1324 = vst [vmem:[#allocation6 + $0x60] sm:$0xff] %v1308_v62  ;;  %v1279_v52 = vmul.f32 %v2313_v59, %v1256_v63  ;;  %v1287_v4 = vmul.f32 %v2313_v59, %v1264_v1 }
 0x4c8   : > { %v1303_v5 = vadd.f32 %v2317_v0, %v1280_v2  ;;  %v1311_v6 = vadd.f32 %v2317_v0, %v1288_v3 }
 0x4c9   : > { %v1302_v7 = vadd.f32 %v2317_v0, %v1279_v52  ;;  %v1310_v8 = vadd.f32 %v2317_v0, %v1287_v4 }
 0x4ca   : > { %1319 = vst [vmem:[#allocation6 + $0x38] sm:$0xff] %v1303_v5  ;;  %1327 = vst [vmem:[#allocation6 + $0x78] sm:$0xff] %v1311_v6 }
 0x4cb   : > { %1318 = vst [vmem:[#allocation6 + $0x30] sm:$0xff] %v1302_v7  ;;  %1326 = vst [vmem:[#allocation6 + $0x70] sm:$0xff] %v1310_v8 }
 0x4cc PF: > { %p2365_p8 = scmp.eq.s32.totalorder %s1416_s27, 1  ;;  %s1999_s18 = smov [#allocation6]  }
 0x4cd   : > { %s1343_s19 = sshll.u32 %s1999_s18, 4  ;;  %s1344_s19 = int_to_ptr.vmem [resolvable:$true] %s1343_s19 }
 0x4ce   : > { %s1937_s20 = scalar_lea.vmem %s1344_s19, 2048  ;;  %s1943_s21 = scalar_lea.vmem %s1344_s19, 4096 }
 0x4cf   : > { %p1938_p9 = scmp.ne.s32.totalorder %s1344_s19, %s1937_s20  ;;  %p1944_p12 = scmp.lt.s32.totalorder %s1344_s19, %s1344_s19 }
 0x4d0   : > { %p1945_p13 = scmp.lt.s32.totalorder %s1943_s21, %s1937_s20 }
 0x4d1   : > { %p1939_p10 = pnand %p1938_p9, %p2365_p8 }
 0x4d2   : > { %p1946_p0 = por %p1945_p13, %p1944_p12 }
 0x4d3   : > { %p1940_p11 = pneg %p1939_p10 }
 0x4d5   : > { %p1947_p1 = pnand %p1946_p0, %p1940_p11 }
 0x4d7   : > { %1950 = shalt.err (!%p1947_p1)
}
 0x4d8   : > { %s1951_s24 = scalar_lea.hbm %s2406_s7, 2048 }
 0x4d9   : > { %p1952_p2 = scmp.ne.s32.totalorder %s2406_s7, %s1951_s24  ;;  %p1957_p5 = scmp.lt.u32.totalorder %s1951_s24, %s2406_s7 }
 0x4db   : > { %p1953_p3 = pnand %p1952_p2, %p2365_p8 }
 0x4dd   : > { %p1954_p4 = pneg %p1953_p3 }
 0x4df   : > { %p1959_p6 = pnand %p1957_p5, %p1954_p4 }
 0x4e1   : > { %1962 = shalt.err (!%p1959_p6)
}
 0x4e2   : > { %s2000_s10 = smov 128   ;;  %s2001_s11 = smov 8  }
 0x4e3   : > { %1890 = dma.vmem_to_hbm [thread:$0]  (%p2365_p8), %s1344_s19, 2048, %s2406_s7, [#allocation7], %s2000_s10, %s2000_s10, %s2001_s11  }
 0x4e4 PF: > { %p1898_p7 = scmp.ge.s32.totalorder %s1989_s26, 2  ;;  %p1899_p9 = scmp.eq.s32.totalorder %s1417_s28, 1 }
 0x4e6   : > { %p1894_p10 = pnand %p1899_p9, %p1898_p7 }
 0x4e8   : > { %1976 = dma.done.wait (!%p1894_p10), [#allocation7], 2048  }
 0x4e9   : > { %1978 = vsyncadd (!%p1894_p10), [#allocation7], 4294965248  ;;  %s20_s26 = sadd.s32 1, %s1989_s26   ;;  %s2408_s24 = smov %s1985_s25 }
 0x4ea   : > { %p17_p11 = scmp.ge.s32.totalorder %s20_s26, 4   ;;  %s2409_s25 = smov %s2411_s29 }
 0x4ec   :  { %19 = sbr.rel (!%p17_p11) target bundleno = 3 (0x3), region = 99 }
 0x4f3   :  { %1364 = vsyncpa [#allocation7], 1 }
 0x4f4   :  { %1366 = vsyncpa [#allocation7 + $0x1], 1 }

</bundles_post_ra>
